<compile_context>
chip_gen: v7x
topology: tpu7x:2x2x1
jax: 0.10.0
libtpu: 0.0.40
codegen_flags: <defaults>
</compile_context>

<pallas_src>
import jax
import jax.numpy as jnp
from jax.experimental import pallas as pl
from jax.experimental.pallas import tpu as pltpu

# ---- physical constants (copied verbatim from the PyTorch module) ----------
H_CONST = 6.62607015e-34
KB_CONST = 1.380649e-23
J_TO_KCAL = 4184.0
R_CONST = 8.31
TEMPERATURE = 273.0 + 80.0
S_TO_H = 3.6

LEAKY_SLOPE = 0.01  # nn.LeakyReLU() default negative_slope

# Folded Arrhenius constants (compile-time scalars).
ARRH_PREFACTOR = KB_CONST * TEMPERATURE / H_CONST / S_TO_H
ARRH_SCALE = -J_TO_KCAL / (R_CONST * TEMPERATURE)


def _leaky_relu(x):
    return jnp.where(x >= 0, x, LEAKY_SLOPE * x)


def _pack_layout(r_dim, f_dim):
    """Row/col layout of the single packed weight buffer (lane width d_out_pad).

    All row offsets are multiples of 8 (sublane-aligned), lane offsets are 0.
    """
    d_e1 = r_dim + f_dim          # dense_E1 units (reactant ++ ligand)
    d_e2 = f_dim                  # dense_E2 units (ligand)
    d_out = d_e1 + d_e2           # dense_output units (E1 ++ E2)
    d_out_pad = ((d_out + 127) // 128) * 128

    def rup8(x):
        return ((x + 7) // 8) * 8

    w_out_r0 = 0
    w_e1e2_r0 = w_out_r0 + rup8(d_out)
    w_mpnn_r0 = w_e1e2_r0 + rup8(d_e1)
    b_out_r0 = w_mpnn_r0 + rup8(f_dim)
    b_e1e2_r0 = b_out_r0 + 8
    b_mpnn_r0 = b_e1e2_r0 + 8
    rows = b_mpnn_r0 + 8
    return dict(d_e1=d_e1, d_e2=d_e2, d_out=d_out, d_out_pad=d_out_pad,
                w_out_r0=w_out_r0, w_e1e2_r0=w_e1e2_r0, w_mpnn_r0=w_mpnn_r0,
                b_out_r0=b_out_r0, b_e1e2_r0=b_e1e2_r0, b_mpnn_r0=b_mpnn_r0,
                rows=rows)


def advanced_model_kernel(reactant_ref, nodes_ref, adj_ref, w_ref, out_ref):
    B, N, F = nodes_ref.shape
    R = reactant_ref.shape[1]
    lay = _pack_layout(R, F)
    d_e1, d_out = lay['d_e1'], lay['d_out']

    reactant = reactant_ref[...]          # [B, R]
    nodes = nodes_ref[...]                # [B, N, F]
    adj = adj_ref[...]                    # [B, N, N]

    # Carve the single packed weight buffer with static slices (cheap VMEM reads).
    w_out = w_ref[lay['w_out_r0']:lay['w_out_r0'] + d_out, :]           # [d_out, d_out_pad]
    w_e1e2 = w_ref[lay['w_e1e2_r0']:lay['w_e1e2_r0'] + d_e1, 0:d_out]   # [d_e1, d_out]
    w_mpnn = w_ref[lay['w_mpnn_r0']:lay['w_mpnn_r0'] + F, 0:F]          # [F, F]
    b_out = w_ref[lay['b_out_r0']:lay['b_out_r0'] + 1, :]               # [1, d_out_pad]
    b_e1e2 = w_ref[lay['b_e1e2_r0']:lay['b_e1e2_r0'] + 1, 0:d_out]      # [1, d_out]
    b_mpnn = w_ref[lay['b_mpnn_r0']:lay['b_mpnn_r0'] + 1, 0:F]          # [1, F]

    # --- MPNN layer ----------------------------------------------------------
    # TODO(synk): the MPNN class is not defined in the reference file; it is
    # implemented here as one round of A@X message passing, a linear transform,
    # ReLU, and a sum-over-nodes readout producing a graph-level embedding.
    # Message passing on the MXU (batched matmul), not the VPU.
    msg = jnp.einsum('bij,bjf->bif', adj, nodes,
                     preferred_element_type=jnp.float32)                # [B, N, F]
    h2d = jnp.maximum(
        jnp.dot(msg.reshape(B * N, F), w_mpnn,
                preferred_element_type=jnp.float32) + b_mpnn,
        0.0)                                                            # [B*N, F]
    ligand = jnp.sum(h2d.reshape(B, N, F), axis=1)                      # [B, F] readout

    # --- dense_E1 + dense_E2 fused into one matmul ---------------------------
    # e1_in = cat([reactant, ligand]); fused weight columns: [0:d_e1] -> E1
    # (full w_e1), [d_e1:d_out] -> E2 (w_e2 on ligand rows, zeros on reactant
    # rows).  The LeakyReLU output is therefore exactly cat([E1, E2]).
    e1_in = jnp.concatenate([reactant, ligand], axis=1)                 # [B, R+F]
    e1e2 = _leaky_relu(
        jnp.dot(e1_in, w_e1e2, preferred_element_type=jnp.float32)
        + b_e1e2)                                                       # [B, d_out]

    # --- dense_output (ReLU), padded to a lane-dense 256-wide store ----------
    ea = jnp.maximum(
        jnp.dot(e1e2, w_out, preferred_element_type=jnp.float32) + b_out,
        0.0)                                                            # [B, d_out_pad]

    # --- Arrhenius: kb*T/h/s_to_h * exp(-Ea*j_to_kcal/(R*T)) (constants folded)
    out_ref[...] = ARRH_PREFACTOR * jnp.exp(ea * ARRH_SCALE)


def advanced_model_forward(reactant, nodes, adj, packed_w, d_out):
    """Forward pass.  `packed_w` is the ONE-TIME prepped weight buffer."""
    B = reactant.shape[0]
    d_out_pad = packed_w.shape[1]
    vmem = pl.BlockSpec(memory_space=pltpu.MemorySpace.VMEM)
    out_padded = pl.pallas_call(
        advanced_model_kernel,
        out_shape=jax.ShapeDtypeStruct((B, d_out_pad), jnp.float32),
        in_specs=[vmem] * 4,
        out_specs=vmem,
    )(reactant, nodes, adj, packed_w)
    return out_padded[:, :d_out]


def prep_params(params, r_dim, f_dim):
    """One-time packing of all weights/biases into a single VMEM-friendly buffer.

    Done once at init (NOT per forward call): fuses w_e1/w_e2, pads w_out/b_out
    to a 128-multiple lane width, and stacks everything row-wise.
    """
    lay = _pack_layout(r_dim, f_dim)
    d_e1, d_out, d_out_pad = lay['d_e1'], lay['d_out'], lay['d_out_pad']

    # Fused dense_E1 / dense_E2 weight acting on cat([reactant, ligand]).
    w_e1e2 = jnp.zeros((d_e1, d_out), jnp.float32)
    w_e1e2 = w_e1e2.at[:, :d_e1].set(params['w_e1'])
    w_e1e2 = w_e1e2.at[r_dim:, d_e1:].set(params['w_e2'])
    b_e1e2 = jnp.concatenate([params['b_e1'], params['b_e2']], axis=1)

    packed = jnp.zeros((lay['rows'], d_out_pad), jnp.float32)
    packed = packed.at[lay['w_out_r0']:lay['w_out_r0'] + d_out, :d_out].set(params['w_out'])
    packed = packed.at[lay['w_e1e2_r0']:lay['w_e1e2_r0'] + d_e1, :d_out].set(w_e1e2)
    packed = packed.at[lay['w_mpnn_r0']:lay['w_mpnn_r0'] + f_dim, :f_dim].set(params['w_mpnn'])
    packed = packed.at[lay['b_out_r0'], :d_out].set(params['b_out'][0])
    packed = packed.at[lay['b_e1e2_r0'], :d_out].set(b_e1e2[0])
    packed = packed.at[lay['b_mpnn_r0'], :f_dim].set(params['b_mpnn'][0])
    return packed


def init_params(key, r_dim, f_dim):
    """Deterministic parameter init. All weights are [in, out], biases [1, out]."""
    d_e1 = r_dim + f_dim          # dense_E1 units (reactant ++ ligand)
    d_e2 = f_dim                  # dense_E2 units (ligand)
    d_out = d_e1 + d_e2           # dense_output units (E1 ++ E2)
    ks = jax.random.split(key, 8)

    def w(k, din, dout):
        return (jax.random.normal(k, (din, dout), jnp.float32)
                * (1.0 / jnp.sqrt(jnp.float32(din))))

    def b(k, dout):
        return jax.random.normal(k, (1, dout), jnp.float32) * 0.01

    return {
        'w_mpnn': w(ks[0], f_dim, f_dim), 'b_mpnn': b(ks[1], f_dim),
        'w_e1':   w(ks[2], d_e1, d_e1),   'b_e1':   b(ks[3], d_e1),
        'w_e2':   w(ks[4], d_e2, d_e2),   'b_e2':   b(ks[5], d_e2),
        'w_out':  w(ks[6], d_out, d_out), 'b_out':  b(ks[7], d_out),
    }


if __name__ == "__main__":
    key = jax.random.PRNGKey(0)
    B, N, F_DIM, R_DIM = 8, 8, 64, 64   # small shapes consistent with the forward

    k_react, k_nodes, k_adj, k_param = jax.random.split(key, 4)
    reactant = jax.random.normal(k_react, (B, R_DIM), jnp.float32)
    nodes = jax.random.normal(k_nodes, (B, N, F_DIM), jnp.float32)
    # symmetric 0/1 adjacency with self loops
    a = (jax.random.uniform(k_adj, (B, N, N)) > 0.5).astype(jnp.float32)
    adj = jnp.clip(a + jnp.transpose(a, (0, 2, 1)) + jnp.eye(N)[None], 0.0, 1.0)

    params = init_params(k_param, R_DIM, F_DIM)
    # One-time weight prep (hoisted out of the forward path).
    packed_w = jax.block_until_ready(prep_params(params, R_DIM, F_DIM))
    d_out = R_DIM + 2 * F_DIM

    out = advanced_model_forward(reactant, nodes, adj, packed_w, d_out)
    out = jax.block_until_ready(out)
    assert out.shape == (B, d_out)
    assert bool(jnp.all(jnp.isfinite(out)))
    print("KERNEL_OK")
</pallas_src>

<mosaic_0001>
module attributes {stable_mosaic.version = 11 : i64} {
  func.func @advanced_model_kernel(%arg0: memref<8x64xf32, #tpu.memory_space<vmem>>, %arg1: memref<8x8x64xf32, #tpu.memory_space<vmem>>, %arg2: memref<8x8x8xf32, #tpu.memory_space<vmem>>, %arg3: memref<408x256xf32, #tpu.memory_space<vmem>>, %arg4: memref<8x256xf32, #tpu.memory_space<vmem>>) attributes {dimension_semantics = [], scalar_prefetch = 0 : i64, scratch_operands = 0 : i64, tpu.core_type = #tpu.core_type<tc>} {
    %c0 = arith.constant 0 : index
    %c0_0 = arith.constant 0 : index
    %0 = vector.load %arg0[%c0, %c0_0] : memref<8x64xf32, #tpu.memory_space<vmem>>, vector<8x64xf32>
    %c0_1 = arith.constant 0 : index
    %c0_2 = arith.constant 0 : index
    %c0_3 = arith.constant 0 : index
    %1 = vector.load %arg1[%c0_1, %c0_2, %c0_3] : memref<8x8x64xf32, #tpu.memory_space<vmem>>, vector<8x8x64xf32>
    %c0_4 = arith.constant 0 : index
    %c0_5 = arith.constant 0 : index
    %c0_6 = arith.constant 0 : index
    %2 = vector.load %arg2[%c0_4, %c0_5, %c0_6] : memref<8x8x8xf32, #tpu.memory_space<vmem>>, vector<8x8x8xf32>
    %c0_7 = arith.constant 0 : index
    %c0_8 = arith.constant 0 : index
    %3 = vector.load %arg3[%c0_7, %c0_8] : memref<408x256xf32, #tpu.memory_space<vmem>>, vector<192x256xf32>
    %c192 = arith.constant 192 : index
    %c0_9 = arith.constant 0 : index
    %4 = vector.load %arg3[%c192, %c0_9] : memref<408x256xf32, #tpu.memory_space<vmem>>, vector<128x192xf32>
    %c320 = arith.constant 320 : index
    %c0_10 = arith.constant 0 : index
    %5 = vector.load %arg3[%c320, %c0_10] : memref<408x256xf32, #tpu.memory_space<vmem>>, vector<64x64xf32>
    %c384 = arith.constant 384 : index
    %c0_11 = arith.constant 0 : index
    %6 = vector.load %arg3[%c384, %c0_11] : memref<408x256xf32, #tpu.memory_space<vmem>>, vector<1x256xf32>
    %c392 = arith.constant 392 : index
    %c0_12 = arith.constant 0 : index
    %7 = vector.load %arg3[%c392, %c0_12] : memref<408x256xf32, #tpu.memory_space<vmem>>, vector<1x192xf32>
    %c400 = arith.constant 400 : index
    %c0_13 = arith.constant 0 : index
    %8 = vector.load %arg3[%c400, %c0_13] : memref<408x256xf32, #tpu.memory_space<vmem>>, vector<1x64xf32>
    "tpu.trace_start"() <{level = 10 : i32, message = "bij,bjf->bif"}> : () -> ()
    %cst = arith.constant dense<0.000000e+00> : vector<8x8x64xf32>
    %9 = tpu.matmul %2, %1, %cst {dimension_numbers = #tpu.dot_dimension_numbers<[2], [1], [1], [2], [0, 0, 0, 1, 1, 2], [0], [0]>} : vector<8x8x8xf32>, vector<8x8x64xf32>, vector<8x8x64xf32> -> vector<8x8x64xf32>
    "tpu.trace_stop"() : () -> ()
    %10 = vector.shape_cast %9 : vector<8x8x64xf32> to vector<64x64xf32>
    %cst_14 = arith.constant dense<0.000000e+00> : vector<64x64xf32>
    %11 = tpu.matmul %10, %5, %cst_14 {dimension_numbers = #tpu.dot_dimension_numbers<[1], [0], [0], [1], [0, 0, 1, 1], [], []>} : vector<64x64xf32>, vector<64x64xf32>, vector<64x64xf32> -> vector<64x64xf32>
    %12 = vector.broadcast %8 : vector<1x64xf32> to vector<64x64xf32>
    %13 = arith.addf %11, %12 : vector<64x64xf32>
    %cst_15 = arith.constant 0.000000e+00 : f32
    %14 = vector.broadcast %cst_15 : f32 to vector<64x64xf32>
    %15 = arith.maximumf %13, %14 : vector<64x64xf32>
    %16 = vector.shape_cast %15 : vector<64x64xf32> to vector<8x8x64xf32>
    %cst_16 = arith.constant dense<0.000000e+00> : vector<8x64xf32>
    %17 = vector.multi_reduction <add>, %16, %cst_16 [1] : vector<8x8x64xf32> to vector<8x64xf32>
    %18 = tpu.concatenate %0, %17 in 1 : vector<8x64xf32>, vector<8x64xf32> -> vector<8x128xf32>
    %cst_17 = arith.constant dense<0.000000e+00> : vector<8x192xf32>
    %19 = tpu.matmul %18, %4, %cst_17 {dimension_numbers = #tpu.dot_dimension_numbers<[1], [0], [0], [1], [0, 0, 1, 1], [], []>} : vector<8x128xf32>, vector<128x192xf32>, vector<8x192xf32> -> vector<8x192xf32>
    %20 = vector.broadcast %7 : vector<1x192xf32> to vector<8x192xf32>
    %21 = arith.addf %19, %20 : vector<8x192xf32>
    %cst_18 = arith.constant 0.000000e+00 : f32
    %22 = vector.broadcast %cst_18 : f32 to vector<8x192xf32>
    %23 = arith.cmpf oge, %21, %22 : vector<8x192xf32>
    %cst_19 = arith.constant 0.00999999977 : f32
    %24 = vector.broadcast %cst_19 : f32 to vector<8x192xf32>
    %25 = arith.mulf %24, %21 : vector<8x192xf32>
    %26 = arith.select %23, %21, %25 : vector<8x192xi1>, vector<8x192xf32>
    %cst_20 = arith.constant dense<0.000000e+00> : vector<8x256xf32>
    %27 = tpu.matmul %26, %3, %cst_20 {dimension_numbers = #tpu.dot_dimension_numbers<[1], [0], [0], [1], [0, 0, 1, 1], [], []>} : vector<8x192xf32>, vector<192x256xf32>, vector<8x256xf32> -> vector<8x256xf32>
    %28 = vector.broadcast %6 : vector<1x256xf32> to vector<8x256xf32>
    %29 = arith.addf %27, %28 : vector<8x256xf32>
    %cst_21 = arith.constant 0.000000e+00 : f32
    %30 = vector.broadcast %cst_21 : f32 to vector<8x256xf32>
    %31 = arith.maximumf %29, %30 : vector<8x256xf32>
    %cst_22 = arith.constant -1.42631662 : f32
    %32 = vector.broadcast %cst_22 : f32 to vector<8x256xf32>
    %33 = arith.mulf %31, %32 : vector<8x256xf32>
    %34 = math.exp %33 : vector<8x256xf32>
    %cst_23 = arith.constant 2.04314627E+12 : f32
    %35 = vector.broadcast %cst_23 : f32 to vector<8x256xf32>
    %36 = arith.mulf %35, %34 : vector<8x256xf32>
    %c0_24 = arith.constant 0 : index
    %c0_25 = arith.constant 0 : index
    %37 = vector.load %arg4[%c0_24, %c0_25] : memref<8x256xf32, #tpu.memory_space<vmem>>, vector<8x256xf32>
    tpu.vector_store %arg4[%c0_24, %c0_25], %36 {strides = array<i32>} : memref<8x256xf32, #tpu.memory_space<vmem>>, vector<8x256xf32>,
    return
  }
}

</mosaic_0001>

<bundles_post_ra>
// kernel: tpu_custom_call.1
= control target key start
LH: loop header
LB: loop body
LE: loop exit
PB: predicated region body
PF: predicated region fallthrough
CT: control target
= control target key end

     0   :  { %9 = vsyncpa [#allocation3], 0  ;;  %s1692_s0 = inlined_call_operand.hbm [shape: f32[8,64], index: 0, kind: input, shape index: {}]   ;;  %s1693_s1 = inlined_call_operand.hbm [shape: f32[8,8,64], index: 1, kind: input, shape index: {}]   ;;  %s1694_s2 = inlined_call_operand.hbm [shape: f32[8,8,8], index: 2, kind: input, shape index: {}]   ;;  %s1695_s3 = inlined_call_operand.hbm [shape: f32[408,256], index: 3, kind: input, shape index: {}]   ;;  %s1696_s4 = inlined_call_operand.hbm [shape: f32[8,256], index: 4, kind: output, shape index: {}]  }
   0x1   :  { %10 = vsyncpa [#allocation6], 0 }
   0x2   :  { %11 = vsyncpa [#allocation9], 0 }
   0x3   :  { %12 = vsyncpa [#allocation4], 0  ;;  %s1535_s15 = smov [#allocation5]   ;;  %s1417_s19 = scalar_lea.hbm %s1693_s1, 1024 }
   0x4   :  { %s28_s16 = sshll.u32 %s1535_s15, 4  ;;  %p1418_p0 = scmp.ne.s32.totalorder %s1693_s1, %s1417_s19  ;;  %s29_s16 = int_to_ptr.vmem [resolvable:$true] %s28_s16 }
   0x5   :  { %p1421_p1 = scmp.lt.u32.totalorder %s1417_s19, %s1693_s1 }
   0x7   :  { %p1423_p2 = pnand %p1421_p1, %p1418_p0 }
   0x9   :  { %1426 = shalt.err (!%p1423_p2)
}
   0xa   :  { %s1427_s24 = scalar_lea.vmem %s29_s16, 1024  ;;  %p1432_p4 = scmp.lt.s32.totalorder %s29_s16, %s29_s16 }
   0xb   :  { %p1428_p3 = scmp.ne.s32.totalorder %s29_s16, %s1427_s24  ;;  %p1433_p5 = scmp.lt.s32.totalorder %s1427_s24, %s1427_s24 }
   0xd   :  { %p1434_p6 = por %p1433_p5, %p1432_p4 }
   0xf   :  { %p1435_p7 = pnand %p1434_p6, %p1428_p3 }
  0x11   :  { %1438 = shalt.err (!%p1435_p7)
}
  0x12   :  { %s1536_s25 = smov 128   ;;  %s1537_s26 = smov 8  }
  0x13   :  { %34 = dma.hbm_to_vmem [thread:$0]  %s1693_s1, 1024, %s29_s16, [#allocation6], %s1536_s25, %s1536_s25, %s1537_s26  }
  0x14   :  { %s1538_s29 = smov [#allocation2]   ;;  %s1539_s5 = smov [#allocation7]  }
  0x15   :  { %s19_s30 = sshll.u32 %s1538_s29, 4  ;;  %s40_s6 = sshll.u32 %s1539_s5, 4  ;;  %s20_s30 = int_to_ptr.vmem [resolvable:$true] %s19_s30  ;;  %s41_s6 = int_to_ptr.vmem [resolvable:$true] %s40_s6 }
  0x16   :  { %s1439_s9 = scalar_lea.hbm %s1692_s0, 128 }
  0x17   :  { %p1440_p8 = scmp.ne.s32.totalorder %s1692_s0, %s1439_s9  ;;  %p1443_p9 = scmp.lt.u32.totalorder %s1439_s9, %s1692_s0 }
  0x19   :  { %p1445_p10 = pnand %p1443_p9, %p1440_p8 }
  0x1b   :  { %1448 = shalt.err (!%p1445_p10)
}
  0x1c   :  { %s1449_s1 = scalar_lea.vmem %s20_s30, 128  ;;  %p1454_p12 = scmp.lt.s32.totalorder %s20_s30, %s20_s30 }
  0x1d   :  { %p1450_p11 = scmp.ne.s32.totalorder %s20_s30, %s1449_s1  ;;  %p1455_p13 = scmp.lt.s32.totalorder %s1449_s1, %s1449_s1 }
  0x1f   :  { %p1456_p0 = por %p1455_p13, %p1454_p12 }
  0x21   :  { %p1457_p1 = pnand %p1456_p0, %p1450_p11 }
  0x23   :  { %1460 = shalt.err (!%p1457_p1)
}
  0x24   :  { %22 = dma.hbm_to_vmem [thread:$0]  %s1692_s0, 128, %s20_s30, [#allocation3]  }
  0x25   :  { %s1461_s18 = scalar_lea.hbm %s1694_s2, 1024 }
  0x26   :  { %p1462_p2 = scmp.ne.s32.totalorder %s1694_s2, %s1461_s18  ;;  %p1465_p3 = scmp.lt.u32.totalorder %s1461_s18, %s1694_s2 }
  0x28   :  { %p1467_p4 = pnand %p1465_p3, %p1462_p2 }
  0x2a   :  { %1470 = shalt.err (!%p1467_p4)
}
  0x2b   :  { %s1471_s23 = scalar_lea.vmem %s41_s6, 1024  ;;  %p1476_p6 = scmp.lt.s32.totalorder %s41_s6, %s41_s6 }
  0x2c   :  { %p1472_p5 = scmp.ne.s32.totalorder %s41_s6, %s1471_s23  ;;  %p1477_p7 = scmp.lt.s32.totalorder %s1471_s23, %s1471_s23 }
  0x2e   :  { %p1478_p8 = por %p1477_p7, %p1476_p6 }
  0x30   :  { %p1479_p9 = pnand %p1478_p8, %p1472_p5 }
  0x32   :  { %1482 = shalt.err (!%p1479_p9)
}
  0x33   :  { %46 = dma.hbm_to_vmem [thread:$0]  %s1694_s2, 1024, %s41_s6, [#allocation6], %s1536_s25, %s1536_s25, %s1537_s26  }
  0x34   :  { %s1540_s27 = smov [#allocation8]   ;;  %s1483_s5 = scalar_lea.hbm %s1695_s3, 13056 }
  0x35   :  { %s52_s28 = sshll.u32 %s1540_s27, 4  ;;  %p1484_p10 = scmp.ne.s32.totalorder %s1695_s3, %s1483_s5  ;;  %s53_s28 = int_to_ptr.vmem [resolvable:$true] %s52_s28 }
  0x36   :  { %p1487_p11 = scmp.lt.u32.totalorder %s1483_s5, %s1695_s3 }
  0x38   :  { %p1489_p12 = pnand %p1487_p11, %p1484_p10 }
  0x3a   :  { %1492 = shalt.err (!%p1489_p12)
}
  0x3b   :  { %s1493_s11 = scalar_lea.vmem %s53_s28, 13056  ;;  %p1498_p0 = scmp.lt.s32.totalorder %s53_s28, %s53_s28 }
  0x3c   :  { %p1494_p13 = scmp.ne.s32.totalorder %s53_s28, %s1493_s11  ;;  %p1499_p1 = scmp.lt.s32.totalorder %s1493_s11, %s1493_s11 }
  0x3e   :  { %p1500_p2 = por %p1499_p1, %p1498_p0 }
  0x40   :  { %p1501_p3 = pnand %p1500_p2, %p1494_p13 }
  0x42   :  { %1504 = shalt.err (!%p1501_p3)
}
  0x43   :  { %s1541_s2 = smov 256   ;;  %s1542_s25 = smov 16  }
  0x44   :  { %58 = dma.hbm_to_vmem [thread:$0]  %s1695_s3, 13056, %s53_s28, [#allocation9], %s1541_s2, %s1541_s2, %s1542_s25  }
  0x45   :  { %1527 = dma.done.wait [#allocation3], 128  }
  0x46   :  { %1528 = vsyncadd [#allocation3], 4294967168 }
  0x47   :  { %1529 = dma.done.wait [#allocation6], 2048  }
  0x48   :  { %1530 = vsyncadd [#allocation6], 4294965248 }
  0x49   :  { %1531 = dma.done.wait [#allocation9], 13056  }
  0x4a   :  { %1532 = vsyncadd [#allocation9], 4294954240  ;;  %v1543_v0 = vmov 0.0   ;;  %vm1544_vm0 = vmmov 0   ;;  %vm181_vm1 = vcmask 64512   ;;  %v72_v1 = vld [vmem:[#allocation5] sm:$0xff] }
  0x4b   :  { %1237 = vmatprep.subr.mxu0 %v1543_v0  ;;  %1239 = vmatprep.mubr.msk.f32.mxu0 %vm1544_vm0, %v1543_v0  ;;  %v80_v2 = vld [vmem:[#allocation7] sm:$0xff]  ;;  %v73_v3 = vld [vmem:[#allocation5 + $0x8] sm:$0xff]  ;;  %v74_v5 = vld [vmem:[#allocation5 + $0x10] sm:$0xff]  ;;  %vm766_vm2 = vcmask 523264   ;;  %vm968_vm3 = vcmask 1041409   ;;  %vm970_vm4 = vcmask 1042434  }
  0x4c   :  { %1242 = vmatprep.subr.mxu1 %v1543_v0  ;;  %1244 = vmatprep.mubr.msk.f32.mxu1 %vm1544_vm0, %v1543_v0  ;;  %v81_v4 = vld [vmem:[#allocation7 + $0x8] sm:$0xff]  ;;  %v75_v6 = vld [vmem:[#allocation5 + $0x18] sm:$0xff]  ;;  %v82_v7 = vld [vmem:[#allocation7 + $0x10] sm:$0xff]  ;;  %vm972_vm5 = vcmask 1043459   ;;  %vm974_vm6 = vcmask 1044484   ;;  %vm976_vm7 = vcmask 1045509  }
  0x4d   :  { %1238 = vmatpush3.msra.mxu0 %v72_v1  ;;  %1243 = vmatpush3.msra.mxu1 %v73_v3  ;;  %v83_v8 = vld [vmem:[#allocation7 + $0x18] sm:$0xff]  ;;  %v76_v9 = vld [vmem:[#allocation5 + $0x20] sm:$0xff]  ;;  %v77_v10 = vld [vmem:[#allocation5 + $0x28] sm:$0xff]  ;;  %vm978_vm8 = vcmask 1046534   ;;  %vm980_vm9 = vcmask 1047559   ;;  %s1545_s3 = smov 64  }
  0x4e   :  { %1240 = vmatmul.mubr.msk.f32.vlgmr.msra.gmra.mrb[0].mxu0 %vm181_vm1, %v80_v2  ;;  %1247 = vmatprep.subr.mxu0 %v1543_v0  ;;  %v84_v11 = vld [vmem:[#allocation7 + $0x20] sm:$0xff]  ;;  %v169_v13 = vld [vmem:[#allocation8 + $0x290] sm:$0xff]  ;;  %v85_v14 = vld [vmem:[#allocation7 + $0x28] sm:$0xff]  ;;  %s1546_s12 = smov [#allocation10]  }
  0x4f   :  { %1245 = vmatmul.mubr.msk.f32.vlgmr.msra.gmra.mrb[0].mxu1 %vm181_vm1, %v81_v4  ;;  %1248 = vmatpush3.msra.mxu0 %v74_v5  ;;  %v168_v12 = vld [vmem:[#allocation8 + $0x280] sm:$0xff]  ;;  %v78_v15 = vld [vmem:[#allocation5 + $0x30] sm:$0xff]  ;;  %v79_v16 = vld [vmem:[#allocation5 + $0x38] sm:$0xff]  ;;  %s1177_s13 = sshll.u32 %s1546_s12, 4  ;;  %s1178_s13 = int_to_ptr.vmem [resolvable:$true] %s1177_s13 }
  0x50   :  { %1252 = vmatprep.subr.mxu1 %v1543_v0  ;;  %1249 = vmatprep.mubr.msk.f32.mxu0 %vm1544_vm0, %v1543_v0  ;;  %v1305_v17 = vpack.c.bf16 %v169_v13, %v168_v12  ;;  %v170_v18 = vld [vmem:[#allocation8 + $0x2a0] sm:$0xff]  ;;  %v171_v19 = vld [vmem:[#allocation8 + $0x2b0] sm:$0xff]  ;;  %v87_v21 = vld [vmem:[#allocation7 + $0x38] sm:$0xff]  ;;  %s1505_s1 = scalar_lea.vmem %s1178_s13, 256  ;;  %p1510_p5 = scmp.lt.s32.totalorder %s1178_s13, %s1178_s13 }
  0x51   :  { %1253 = vmatpush3.msra.mxu1 %v75_v6  ;;  %1254 = vmatprep.mubr.msk.f32.mxu1 %vm1544_vm0, %v1543_v0  ;;  %v86_v20 = vld [vmem:[#allocation7 + $0x30] sm:$0xff]  ;;  %v1309_v22 = vpack.c.bf16 %v171_v19, %v170_v18  ;;  %v172_v23 = vld [vmem:[#allocation8 + $0x2c0] sm:$0xff]  ;;  %v137_v45 = vld [vmem:[#allocation8 + $0x188] sm:$0xff]  ;;  %p1506_p4 = scmp.ne.s32.totalorder %s1178_s13, %s1505_s1  ;;  %p1511_p6 = scmp.lt.s32.totalorder %s1505_s1, %s1505_s1 }
  0x52   :  { %1250 = vmatmul.mubr.msk.f32.vlgmr.msra.gmra.mrb[2].mxu0 %vm181_vm1, %v82_v7  ;;  %1257 = vmatprep.subr.mxu0 %v1543_v0  ;;  %v173_v24 = vld [vmem:[#allocation8 + $0x2d0] sm:$0xff]  ;;  %v174_v26 = vld [vmem:[#allocation8 + $0x2e0] sm:$0xff]  ;;  %v139_v46 = vld [vmem:[#allocation8 + $0x198] sm:$0xff] }
  0x53   :  { %1255 = vmatmul.mubr.msk.f32.vlgmr.msra.gmra.mrb[2].mxu1 %vm181_vm1, %v83_v8  ;;  %1258 = vmatpush3.msra.mxu0 %v76_v9  ;;  %v1313_v25 = vpack.c.bf16 %v173_v24, %v172_v23  ;;  %v175_v27 = vld [vmem:[#allocation8 + $0x2f0] sm:$0xff]  ;;  %v136_v47 = vld [vmem:[#allocation8 + $0x180] sm:$0xff]  ;;  %v1321_v48 = vpack.c.bf16 %v139_v46, %v137_v45  ;;  %v141_v50 = vld [vmem:[#allocation8 + $0x1a8] sm:$0xff]  ;;  %p1512_p7 = por %p1511_p6, %p1510_p5 }
  0x54   :  { %1262 = vmatprep.subr.mxu1 %v1543_v0  ;;  %1259 = vmatprep.mubr.msk.f32.mxu0 %vm1544_vm0, %v1543_v0  ;;  %v1317_v28 = vpack.c.bf16 %v175_v27, %v174_v26  ;;  %v138_v49 = vld [vmem:[#allocation8 + $0x190] sm:$0xff]  ;;  %v143_v51 = vld [vmem:[#allocation8 + $0x1b8] sm:$0xff]  ;;  %v140_v54 = vld [vmem:[#allocation8 + $0x1a0] sm:$0xff] }
  0x55   :  { %1263 = vmatpush3.msra.mxu1 %v77_v10  ;;  %1264 = vmatprep.mubr.msk.f32.mxu1 %vm1544_vm0, %v1543_v0  ;;  %v1323_v52 = vpack.c.bf16 %v138_v49, %v136_v47  ;;  %v1325_v53 = vpack.c.bf16 %v143_v51, %v141_v50  ;;  %v142_v55 = vld [vmem:[#allocation8 + $0x1b0] sm:$0xff]  ;;  %v145_v56 = vld [vmem:[#allocation8 + $0x1c8] sm:$0xff]  ;;  %v147_v57 = vld [vmem:[#allocation8 + $0x1d8] sm:$0xff]  ;;  %p1513_p8 = pnand %p1512_p7, %p1506_p4 }
  0x56   :  { %1260 = vmatmul.mubr.msk.f32.vlgmr.msra.gmra.mrb[4].mxu0 %vm181_vm1, %v84_v11  ;;  %1267 = vmatprep.subr.mxu0 %v1543_v0  ;;  %v1327_v58 = vpack.c.bf16 %v142_v55, %v140_v54  ;;  %v1329_v59 = vpack.c.bf16 %v147_v57, %v145_v56  ;;  %v144_v60 = vld [vmem:[#allocation8 + $0x1c0] sm:$0xff]  ;;  %v146_v61 = vld [vmem:[#allocation8 + $0x1d0] sm:$0xff]  ;;  %v149_v62 = vld [vmem:[#allocation8 + $0x1e8] sm:$0xff] }
  0x57   :  { %1265 = vmatmul.mubr.msk.f32.vlgmr.msra.gmra.mrb[4].mxu1 %vm181_vm1, %v85_v14  ;;  %1268 = vmatpush3.msra.mxu0 %v78_v15  ;;  %v151_v63 = vld [vmem:[#allocation8 + $0x1f8] sm:$0xff]  ;;  %v148_v2 = vld [vmem:[#allocation8 + $0x1e0] sm:$0xff]  ;;  %v150_v3 = vld [vmem:[#allocation8 + $0x1f0] sm:$0xff] }
  0x58   :  { %1272 = vmatprep.subr.mxu1 %v1543_v0  ;;  %1269 = vmatprep.mubr.msk.f32.mxu0 %vm1544_vm0, %v1543_v0  ;;  %v1333_v1 = vpack.c.bf16 %v151_v63, %v149_v62  ;;  %v153_v4 = vld [vmem:[#allocation8 + $0x208] sm:$0xff]  ;;  %v155_v5 = vld [vmem:[#allocation8 + $0x218] sm:$0xff]  ;;  %v1335_v6 = vpack.c.bf16 %v150_v3, %v148_v2  ;;  %v152_v8 = vld [vmem:[#allocation8 + $0x200] sm:$0xff] }
  0x59   :  { %1273 = vmatpush3.msra.mxu1 %v79_v16  ;;  %1274 = vmatprep.mubr.msk.f32.mxu1 %vm1544_vm0, %v1543_v0  ;;  %v1337_v7 = vpack.c.bf16 %v155_v5, %v153_v4  ;;  %v154_v9 = vld [vmem:[#allocation8 + $0x210] sm:$0xff]  ;;  %v157_v10 = vld [vmem:[#allocation8 + $0x228] sm:$0xff]  ;;  %v159_v11 = vld [vmem:[#allocation8 + $0x238] sm:$0xff] }
  0x5a   :  { %1270 = vmatmul.mubr.msk.f32.vlgmr.msra.gmra.mrb[6].mxu0 %vm181_vm1, %v86_v20  ;;  %1306 = vmatprep.subr.bf16.mxu1 %v1305_v17  ;;  %v1339_v12 = vpack.c.bf16 %v154_v9, %v152_v8  ;;  %v1341_v13 = vpack.c.bf16 %v159_v11, %v157_v10  ;;  %v156_v14 = vld [vmem:[#allocation8 + $0x220] sm:$0xff]  ;;  %v158_v15 = vld [vmem:[#allocation8 + $0x230] sm:$0xff]  ;;  %v161_v16 = vld [vmem:[#allocation8 + $0x248] sm:$0xff] }
  0x5b   :  { %1275 = vmatmul.mubr.msk.f32.vlgmr.msra.gmra.mrb[6].mxu1 %vm181_vm1, %v87_v21  ;;  %v1343_v18 = vpack.c.bf16 %v158_v15, %v156_v14  ;;  %v160_v20 = vld [vmem:[#allocation8 + $0x240] sm:$0xff]  ;;  %v162_v21 = vld [vmem:[#allocation8 + $0x250] sm:$0xff]  ;;  %v167_v23 = vld [vmem:[#allocation8 + $0x278] sm:$0xff] }
  0x5c   :  { %1308 = vmatpush3.bf16.msra.mxu1 %v1305_v17  ;;  %v163_v17 = vld [vmem:[#allocation8 + $0x258] sm:$0xff]  ;;  %v1347_v24 = vpack.c.bf16 %v162_v21, %v160_v20  ;;  %v164_v26 = vld [vmem:[#allocation8 + $0x260] sm:$0xff]  ;;  %v166_v27 = vld [vmem:[#allocation8 + $0x270] sm:$0xff] }
  0x5d   :  { %1310 = vmatprep.subr.bf16.mxu1 %v1309_v22  ;;  %v1345_v19 = vpack.c.bf16 %v163_v17, %v161_v16 }
  0x60   :  { %1312 = vmatpush3.bf16.msra.mxu1 %v1309_v22  ;;  %v165_v22 = vld [vmem:[#allocation8 + $0x268] sm:$0xff] }
  0x61   :  { %1314 = vmatprep.subr.bf16.mxu1 %v1313_v25 }
  0x64   :  { %1316 = vmatpush3.bf16.msra.mxu1 %v1313_v25  ;;  %v1349_v25 = vpack.c.bf16 %v167_v23, %v165_v22 }
  0x65   :  { %1318 = vmatprep.subr.bf16.mxu1 %v1317_v28 }
  0x68   :  { %1320 = vmatpush3.bf16.msra.mxu1 %v1317_v28  ;;  %v1351_v28 = vpack.c.bf16 %v166_v27, %v164_v26 }
  0x69   :  { %1322 = vmatprep.subr.bf16.mxu1 %v1321_v48 }
 0x121   :  { %v251_v29 = vpop.f32.mrb[0].mxu0 }
 0x122   :  { %v1241_v30 = vpop.f32.mrb[1].mxu0  ;;  %v324_v31 = vpop.f32.mrb[0].mxu1  ;;  %1293 = vmatprep.mubr.msk.f32.mxu1 %vm766_vm2, %v251_v29  ;;  %v180_v29 = vld [vmem:[#allocation8 + $0x320] ss:$0 sm:$0xff] }
 0x123   :  { %v1246_v32 = vpop.f32.mrb[1].mxu1  ;;  %1294 = vmatmul.mubr.msk.f32.vlgmr.msra.gmra.mrb[8].mxu1 %vm766_vm2, %v324_v31 }
 0x124   :  { %1324 = vmatpush1.bf16.msra.mxu1 %v1323_v52 }
 0x125   :  { %v397_v33 = vpop.f32.mrb[2].mxu0  ;;  %1326 = vmatprep.subr.bf16.mxu1 %v1325_v53 }
 0x126   :  { %v1251_v34 = vpop.f32.mrb[3].mxu0  ;;  %v470_v35 = vpop.f32.mrb[2].mxu1  ;;  %1296 = vmatprep.mubr.msk.f32.mxu1 %vm766_vm2, %v397_v33 }
 0x127   :  { %v1256_v36 = vpop.f32.mrb[3].mxu1  ;;  %1297 = vmatmul.mubr.msk.f32.gmra.mrb[10].mxu1 %vm766_vm2, %v470_v35 }
 0x128   :  { %1328 = vmatpush1.bf16.msra.mxu1 %v1327_v58 }
 0x129   :  { %v543_v37 = vpop.f32.mrb[4].mxu0  ;;  %1330 = vmatprep.subr.bf16.mxu1 %v1329_v59 }
 0x12a   :  { %v1261_v38 = vpop.f32.mrb[5].mxu0  ;;  %v616_v39 = vpop.f32.mrb[4].mxu1  ;;  %1299 = vmatprep.mubr.msk.f32.mxu1 %vm766_vm2, %v543_v37 }
 0x12b   :  { %v1266_v40 = vpop.f32.mrb[5].mxu1  ;;  %1300 = vmatmul.mubr.msk.f32.gmra.mrb[12].mxu1 %vm766_vm2, %v616_v39 }
 0x12d   :  { %v689_v41 = vpop.f32.mrb[6].mxu0 }
 0x12e   :  { %v1271_v42 = vpop.f32.mrb[7].mxu0  ;;  %v762_v43 = vpop.f32.mrb[6].mxu1  ;;  %1302 = vmatprep.mubr.msk.f32.mxu1 %vm766_vm2, %v689_v41 }
 0x12f   :  { %v1276_v44 = vpop.f32.mrb[7].mxu1  ;;  %1303 = vmatmul.mubr.msk.f32.gmra.mrb[14].mxu1 %vm766_vm2, %v762_v43 }
 0x130   :  { %1061 = vmatprep.mubr.f32.mxu1 %v1543_v0  ;;  %v1331_v0 = vpack.c.bf16 %v146_v61, %v144_v60 }
 0x132   :  { %1332 = vmatpush1.bf16.msra.mxu1 %v1331_v0 }
 0x133   :  { %1334 = vmatprep.subr.bf16.mxu1 %v1333_v1 }
 0x136   :  { %1336 = vmatpush1.bf16.msra.mxu1 %v1335_v6 }
 0x137   :  { %1338 = vmatprep.subr.bf16.mxu1 %v1337_v7 }
 0x13a   :  { %1340 = vmatpush1.bf16.msra.mxu1 %v1339_v12 }
 0x13b   :  { %1342 = vmatprep.subr.bf16.mxu1 %v1341_v13 }
 0x13e   :  { %1344 = vmatpush1.bf16.msra.mxu1 %v1343_v18 }
 0x13f   :  { %1346 = vmatprep.subr.bf16.mxu1 %v1345_v19 }
 0x142   :  { %1348 = vmatpush1.bf16.msra.mxu1 %v1347_v24 }
 0x143   :  { %1350 = vmatprep.subr.bf16.mxu1 %v1349_v25 }
 0x146   :  { %1352 = vmatpush1.bf16.msra.mxu1 %v1351_v28 }
 0x1f6   :  { %v1295_v30 = vpop.f32.mrb[8].mxu1 }
 0x1f7   :  { %v863_v31 = vadd.f32 %v1295_v30, %v180_v29  ;;  %v857_v32 = vpop.f32.mrb[9].mxu1 }
 0x1f8   :  { %v858_v33 = vadd.f32 %v857_v32, %v180_v29 }
 0x1f9   :  { %v897_v34 = vmax.f32 %v863_v31, 0.0 }
 0x1fa   :  { %v896_v35 = vmax.f32 %v858_v33, 0.0  ;;  %v1298_v36 = vpop.f32.mrb[10].mxu1 }
 0x1fb   :  { %v911_v37 = vsel %vm766_vm2, %v897_v34, 0.0  ;;  %v873_v38 = vadd.f32 %v1298_v36, %v180_v29  ;;  %v867_v39 = vpop.f32.mrb[11].mxu1 }
 0x1fc   :  { %v912_v40 = vrot.slane %v911_v37, 4  ;;  %v904_v41 = vsel %vm766_vm2, %v896_v35, 0.0  ;;  %v868_v42 = vadd.f32 %v867_v39, %v180_v29  ;;  %v89_v39 = vld [vmem:[#allocation8 + $0x8] sm:$0xff] }
 0x1fd   :  { %v905_v43 = vrot.slane %v904_v41, 4  ;;  %v899_v44 = vmax.f32 %v873_v38, 0.0 }
 0x1fe   :  { %v913_v45 = vadd.f32 %v912_v40, %v911_v37  ;;  %v898_v46 = vmax.f32 %v868_v42, 0.0  ;;  %v1301_v47 = vpop.f32.mrb[12].mxu1  ;;  %v91_v40 = vld [vmem:[#allocation8 + $0x18] sm:$0xff] }
 0x1ff   :  { %v906_v48 = vadd.f32 %v905_v43, %v904_v41  ;;  %v925_v49 = vsel %vm766_vm2, %v899_v44, 0.0  ;;  %v883_v50 = vadd.f32 %v1301_v47, %v180_v29  ;;  %v877_v51 = vpop.f32.mrb[13].mxu1  ;;  %v88_v41 = vld [vmem:[#allocation8] sm:$0xff]  ;;  %v1353_v44 = vpack.c.bf16 %v91_v40, %v89_v39  ;;  %v95_v47 = vld [vmem:[#allocation8 + $0x38] sm:$0xff] }
 0x200   :  { %v914_v52 = vrot.slane %v913_v45, 2  ;;  %v926_v53 = vrot.slane %v925_v49, 4  ;;  %v918_v54 = vsel %vm766_vm2, %v898_v46, 0.0  ;;  %v878_v55 = vadd.f32 %v877_v51, %v180_v29  ;;  %v93_v46 = vld [vmem:[#allocation8 + $0x28] sm:$0xff]  ;;  %v120_v40 = vld [vmem:[#allocation8 + $0x100] sm:$0xff] }
 0x201   :  { %v907_v56 = vrot.slane %v906_v48, 2  ;;  %v919_v57 = vrot.slane %v918_v54, 4  ;;  %v901_v58 = vmax.f32 %v883_v50, 0.0  ;;  %v1357_v51 = vpack.c.bf16 %v95_v47, %v93_v46  ;;  %1354 = vmatprep.subr.bf16.mxu0 %v1353_v44  ;;  %v124_v46 = vld [vmem:[#allocation8 + $0x120] sm:$0xff]  ;;  %v126_v47 = vld [vmem:[#allocation8 + $0x130] sm:$0xff] }
 0x202   :  { %v915_v59 = vadd.f32 %v914_v52, %v913_v45  ;;  %v927_v60 = vadd.f32 %v926_v53, %v925_v49  ;;  %v900_v61 = vmax.f32 %v878_v55, 0.0  ;;  %v1304_v62 = vpop.f32.mrb[14].mxu1  ;;  %v90_v45 = vld [vmem:[#allocation8 + $0x10] sm:$0xff]  ;;  %v92_v52 = vld [vmem:[#allocation8 + $0x20] sm:$0xff] }
 0x203   :  { %v908_v63 = vadd.f32 %v907_v56, %v906_v48  ;;  %v920_v0 = vadd.f32 %v919_v57, %v918_v54  ;;  %v939_v1 = vsel %vm766_vm2, %v901_v58, 0.0  ;;  %v893_v2 = vadd.f32 %v1304_v62, %v180_v29  ;;  %v887_v3 = vpop.f32.mrb[15].mxu1  ;;  %v94_v53 = vld [vmem:[#allocation8 + $0x30] sm:$0xff]  ;;  %v97_v54 = vld [vmem:[#allocation8 + $0x48] sm:$0xff]  ;;  %v99_v56 = vld [vmem:[#allocation8 + $0x58] sm:$0xff] }
 0x204   :  { %v916_v4 = vrot.slane %v915_v59, 1  ;;  %v928_v5 = vrot.slane %v927_v60, 2  ;;  %v940_v6 = vrot.slane %v939_v1, 4  ;;  %v932_v7 = vsel %vm766_vm2, %v900_v61, 0.0 }
 0x205   :  { %v909_v8 = vrot.slane %v908_v63, 1  ;;  %v921_v9 = vrot.slane %v920_v0, 2  ;;  %v933_v10 = vrot.slane %v932_v7, 4  ;;  %v903_v11 = vmax.f32 %v893_v2, 0.0  ;;  %v101_v2 = vld [vmem:[#allocation8 + $0x68] sm:$0xff] }
 0x206   :  { %v917_v12 = vadd.f32 %v916_v4, %v915_v59  ;;  %v929_v13 = vadd.f32 %v928_v5, %v927_v60  ;;  %v941_v14 = vadd.f32 %v940_v6, %v939_v1  ;;  %v888_v15 = vadd.f32 %v887_v3, %v180_v29  ;;  %v103_v3 = vld [vmem:[#allocation8 + $0x78] sm:$0xff] }
 0x207   :  { %v910_v16 = vadd.f32 %v909_v8, %v908_v63  ;;  %v922_v17 = vadd.f32 %v921_v9, %v920_v0  ;;  %v934_v18 = vadd.f32 %v933_v10, %v932_v7  ;;  %v953_v19 = vsel %vm766_vm2, %v903_v11, 0.0  ;;  %v96_v63 = vld [vmem:[#allocation8 + $0x40] sm:$0xff]  ;;  %v98_v0 = vld [vmem:[#allocation8 + $0x50] sm:$0xff]  ;;  %v105_v11 = vld [vmem:[#allocation8 + $0x88] sm:$0xff] }
 0x208   :  { %v930_v20 = vrot.slane %v929_v13, 1  ;;  %v942_v21 = vrot.slane %v941_v14, 2  ;;  %v954_v22 = vrot.slane %v953_v19, 4  ;;  %v902_v23 = vmax.f32 %v888_v15, 0.0  ;;  %v100_v8 = vld [vmem:[#allocation8 + $0x60] sm:$0xff]  ;;  %v102_v9 = vld [vmem:[#allocation8 + $0x70] sm:$0xff] }
 0x209   :  { %v969_v24 = vsel %vm968_vm3, %v917_v12, %v910_v16  ;;  %v923_v25 = vrot.slane %v922_v17, 1  ;;  %v935_v26 = vrot.slane %v934_v18, 2  ;;  %v1355_v50 = vpack.c.bf16 %v90_v45, %v88_v41  ;;  %v107_v12 = vld [vmem:[#allocation8 + $0x98] sm:$0xff]  ;;  %v104_v16 = vld [vmem:[#allocation8 + $0x80] sm:$0xff]  ;;  %v122_v41 = vld [vmem:[#allocation8 + $0x110] sm:$0xff] }
 0x20a   :  { %v943_v27 = vadd.f32 %v942_v21, %v941_v14  ;;  %v955_v28 = vadd.f32 %v954_v22, %v953_v19  ;;  %v946_v30 = vsel %vm766_vm2, %v902_v23, 0.0  ;;  %v931_v33 = vadd.f32 %v930_v20, %v929_v13  ;;  %v111_v19 = vld [vmem:[#allocation8 + $0xb8] sm:$0xff]  ;;  %v108_v22 = vld [vmem:[#allocation8 + $0xa0] sm:$0xff]  ;;  %v110_v23 = vld [vmem:[#allocation8 + $0xb0] sm:$0xff] }
 0x20b   :  { %v924_v31 = vadd.f32 %v923_v25, %v922_v17  ;;  %v936_v29 = vadd.f32 %v935_v26, %v934_v18  ;;  %v947_v32 = vrot.slane %v946_v30, 4  ;;  %1356 = vmatpush1.bf16.msra.mxu0 %v1355_v50  ;;  %v1359_v59 = vpack.c.bf16 %v94_v53, %v92_v52  ;;  %v106_v17 = vld [vmem:[#allocation8 + $0x90] sm:$0xff]  ;;  %v109_v18 = vld [vmem:[#allocation8 + $0xa8] sm:$0xff]  ;;  %v115_v25 = vld [vmem:[#allocation8 + $0xd8] sm:$0xff] }
 0x20c   :  { %v944_v34 = vrot.slane %v943_v27, 1  ;;  %v956_v35 = vrot.slane %v955_v28, 2  ;;  %1358 = vmatprep.subr.bf16.mxu0 %v1357_v51  ;;  %v1361_v62 = vpack.c.bf16 %v99_v56, %v97_v54  ;;  %v1363_v5 = vpack.c.bf16 %v98_v0, %v96_v63  ;;  %v129_v52 = vld [vmem:[#allocation8 + $0x148] sm:$0xff]  ;;  %v131_v53 = vld [vmem:[#allocation8 + $0x158] sm:$0xff]  ;;  %v130_v56 = vld [vmem:[#allocation8 + $0x150] sm:$0xff] }
 0x20d   :  { %v937_v36 = vrot.slane %v936_v29, 1  ;;  %v948_v37 = vadd.f32 %v947_v32, %v946_v30  ;;  %v971_v38 = vsel %vm970_vm4, %v924_v31, %v969_v24  ;;  %v1365_v7 = vpack.c.bf16 %v103_v3, %v101_v2  ;;  %v113_v24 = vld [vmem:[#allocation8 + $0xc8] sm:$0xff]  ;;  %v114_v30 = vld [vmem:[#allocation8 + $0xd0] sm:$0xff] }
 0x20e   :  { %v957_v42 = vadd.f32 %v956_v35, %v955_v28  ;;  %v973_v43 = vsel %vm972_vm5, %v931_v33, %v971_v38  ;;  %v945_v55 = vadd.f32 %v944_v34, %v943_v27  ;;  %v1367_v14 = vpack.c.bf16 %v102_v9, %v100_v8  ;;  %v112_v28 = vld [vmem:[#allocation8 + $0xc0] sm:$0xff]  ;;  %v117_v31 = vld [vmem:[#allocation8 + $0xe8] sm:$0xff]  ;;  %v118_v35 = vld [vmem:[#allocation8 + $0xf0] sm:$0xff] }
 0x20f   :  { %v938_v48 = vadd.f32 %v937_v36, %v936_v29  ;;  %v949_v49 = vrot.slane %v948_v37, 2  ;;  %1360 = vmatpush1.bf16.msra.mxu0 %v1359_v59  ;;  %v1369_v15 = vpack.c.bf16 %v107_v12, %v105_v11  ;;  %v1371_v20 = vpack.c.bf16 %v106_v17, %v104_v16  ;;  %v119_v29 = vld [vmem:[#allocation8 + $0xf8] sm:$0xff]  ;;  %v116_v34 = vld [vmem:[#allocation8 + $0xe0] sm:$0xff]  ;;  %v121_v36 = vld [vmem:[#allocation8 + $0x108] sm:$0xff] }
 0x210   :  { %v958_v60 = vrot.slane %v957_v42, 1  ;;  %1362 = vmatprep.subr.bf16.mxu0 %v1361_v62  ;;  %v1373_v21 = vpack.c.bf16 %v111_v19, %v109_v18  ;;  %v1375_v26 = vpack.c.bf16 %v110_v23, %v108_v22  ;;  %v1377_v27 = vpack.c.bf16 %v115_v25, %v113_v24  ;;  %v135_v59 = vld [vmem:[#allocation8 + $0x178] sm:$0xff]  ;;  %v134_v62 = vld [vmem:[#allocation8 + $0x170] sm:$0xff] }
 0x211   :  { %v950_v57 = vadd.f32 %v949_v49, %v948_v37  ;;  %v975_v58 = vsel %vm974_vm6, %v938_v48, %v973_v43  ;;  %v1379_v32 = vpack.c.bf16 %v114_v30, %v112_v28  ;;  %v1381_v33 = vpack.c.bf16 %v119_v29, %v117_v31  ;;  %v123_v37 = vld [vmem:[#allocation8 + $0x118] sm:$0xff] }
 0x212   :  { %v977_v61 = vsel %vm976_vm7, %v945_v55, %v975_v58  ;;  %v959_v6 = vadd.f32 %v958_v60, %v957_v42  ;;  %v1383_v38 = vpack.c.bf16 %v118_v35, %v116_v34  ;;  %v1385_v39 = vpack.c.bf16 %v123_v37, %v121_v36  ;;  %v125_v42 = vld [vmem:[#allocation8 + $0x128] sm:$0xff]  ;;  %v127_v43 = vld [vmem:[#allocation8 + $0x138] sm:$0xff]  ;;  %v128_v55 = vld [vmem:[#allocation8 + $0x140] sm:$0xff] }
 0x213   :  { %v951_v1 = vrot.slane %v950_v57, 1  ;;  %1364 = vmatpush1.bf16.msra.mxu0 %v1363_v5  ;;  %v1387_v44 = vpack.c.bf16 %v122_v41, %v120_v40  ;;  %v1389_v45 = vpack.c.bf16 %v127_v43, %v125_v42  ;;  %v1391_v48 = vpack.c.bf16 %v126_v47, %v124_v46  ;;  %v71_v49 = vld [vmem:[#allocation2] sm:$0xff]  ;;  %v133_v58 = vld [vmem:[#allocation8 + $0x168] sm:$0xff] }
 0x214   :  { %1366 = vmatprep.subr.bf16.mxu0 %v1365_v7  ;;  %v1393_v54 = vpack.c.bf16 %v131_v53, %v129_v52  ;;  %v1397_v60 = vpack.c.bf16 %v135_v59, %v133_v58  ;;  %v987_v0 = vlaneseq  ;;  %v179_v3 = vld [vmem:[#allocation8 + $0x310] ss:$8 sm:$0x3] }
 0x215   :  { %v952_v4 = vadd.f32 %v951_v1, %v950_v57  ;;  %v1395_v57 = vpack.c.bf16 %v130_v56, %v128_v55 }
 0x216   :  { %v988_v1 = vshrl.u32 %v987_v0, 7 }
 0x217   :  { %v979_v10 = vsel %vm978_vm8, %v952_v4, %v977_v61  ;;  %1368 = vmatpush1.bf16.msra.mxu0 %v1367_v14  ;;  %v132_v61 = vld [vmem:[#allocation8 + $0x160] sm:$0xff] }
 0x218   :  { %v981_v13 = vsel %vm980_vm9, %v959_v6, %v979_v10  ;;  %1370 = vmatprep.subr.bf16.mxu0 %v1369_v15  ;;  %v1399_v63 = vpack.c.bf16 %v134_v62, %v132_v61  ;;  %v989_v2 = vsub.s32 0, %v988_v1  ;;  %v993_v4 = vsub.s32 1, %v988_v1  ;;  %v177_v15 = vld [vmem:[#allocation8 + $0x300] ss:$8 sm:$0x3] }
 0x219   :  { %982 = vrot.lane.b32.xlu0 %v981_v13, %s1545_s3 }
 0x21a   :  { %v990_v5 = vrot.slane %v179_v3, %v989_v2  ;;  %v994_v6 = vrot.slane %v179_v3, %v993_v4  ;;  %v1078_v16 = vrot.slane %v177_v15, %v989_v2  ;;  %v1082_v17 = vrot.slane %v177_v15, %v993_v4 }
 0x21b   :  { %1372 = vmatpush1.bf16.msra.mxu0 %v1371_v20 }
 0x21c   :  { %1374 = vmatprep.subr.bf16.mxu0 %v1373_v21 }
 0x21f   :  { %1376 = vmatpush1.bf16.msra.mxu0 %v1375_v26 }
 0x220   :  { %1378 = vmatprep.subr.bf16.mxu0 %v1377_v27 }
 0x223   :  { %1380 = vmatpush1.bf16.msra.mxu0 %v1379_v32 }
 0x224   :  { %1382 = vmatprep.subr.bf16.mxu0 %v1381_v33 }
 0x227   :  { %1384 = vmatpush1.bf16.msra.mxu0 %v1383_v38 }
 0x228   :  { %1386 = vmatprep.subr.bf16.mxu0 %v1385_v39 }
 0x22b   :  { %1388 = vmatpush1.bf16.msra.mxu0 %v1387_v44 }
 0x22c   :  { %1390 = vmatprep.subr.bf16.mxu0 %v1389_v45 }
 0x22f   :  { %1392 = vmatpush1.bf16.msra.mxu0 %v1391_v48 }
 0x230   :  { %1394 = vmatprep.subr.bf16.mxu0 %v1393_v54 }
 0x233   :  { %1396 = vmatpush1.bf16.msra.mxu0 %v1395_v57 }
 0x234   :  { %1398 = vmatprep.subr.bf16.mxu0 %v1397_v60 }
 0x237   :  { %1400 = vmatpush1.bf16.msra.mxu0 %v1399_v63 }
 0x28b   :  { %v983_v50 = vpop.permute.xlu0 %982 }
 0x28c   :  { %v985_v51 = vsel %vm766_vm2, %v71_v49, %v983_v50 }
 0x28d   :  { %1062 = vmatmul.mubr.f32.vlgmr.msra.gmra.mrb[16].mxu1 %v985_v51 }
 0x360   :  { %v1063_v7 = vpop.f32.mrb[16].mxu1 }
 0x361   :  { %v1064_v8 = vadd.f32 %v1063_v7, %v990_v5  ;;  %v1065_v9 = vpop.f32.mrb[17].mxu1 }
 0x362   :  { %v1066_v10 = vadd.f32 %v1065_v9, %v994_v6 }
 0x363   :  { %v1070_v11 = vmul.f32 0.01, %v1064_v8  ;;  %vm1068_vm10 = vcmp.ge.f32.partialorder %v1064_v8, 0.0 }
 0x364   :  { %vm1069_vm11 = vcmp.ge.f32.partialorder %v1066_v10, 0.0  ;;  %v1071_v12 = vmul.f32 0.01, %v1066_v10 }
 0x365   :  { %v1072_v14 = vsel %vm1068_vm10, %v1064_v8, %v1070_v11 }
 0x366   :  { %v1073_v13 = vsel %vm1069_vm11, %v1066_v10, %v1071_v12 }
 0x367   :  { %1204 = vmatprep.mubr.msk.f32.mxu0 %vm766_vm2, %v1073_v13 }
 0x368   :  { %1153 = vmatmul.mubr.f32.vlgmr.msra.gmra.mrb[8].mxu0 %v1072_v14 }
 0x43b   :  { %v1154_v18 = vpop.f32.mrb[8].mxu0 }
 0x43c   :  { %v1155_v19 = vadd.f32 %v1154_v18, %v1078_v16  ;;  %v1156_v20 = vpop.f32.mrb[9].mxu0 }
 0x43d   :  { %v1157_v21 = vadd.f32 %v1156_v20, %v1082_v17 }
 0x43e   :  { %v1159_v22 = vmax.f32 %v1155_v19, 0.0 }
 0x43f   :  { %v1160_v23 = vmax.f32 %v1157_v21, 0.0 }
 0x440   :  { %v1161_v24 = vmul.f32 -1.4263166, %v1159_v22 }
 0x441   :  { %v1162_v25 = vmul.f32 -1.4263166, %v1160_v23 }
 0x442   :  { %v1163_v26 = vmul.f32 1.442695, %v1161_v24 }
 0x443   :  { %v1165_v27 = vmul.f32 1.442695, %v1162_v25 }
 0x444   :  { %1413 = vpow2.f32 %v1163_v26 }
 0x445   :  { %1415 = vpow2.f32 %v1165_v27 }
 0x44e   :  { %v1414_v28 = vpop.eup %1413 }
 0x44f   :  { %v1416_v30 = vpop.eup %1415  ;;  %v1167_v31 = vmul.f32 2.0431463e+12, %v1414_v28 }
 0x450   :  { %v1168_v29 = vmul.f32 2.0431463e+12, %v1416_v30 }
 0x451   :  { %1169 = vst [vmem:[#allocation10] sm:$0xff] %v1167_v31 }
 0x452   :  { %1170 = vst [vmem:[#allocation10 + $0x8] sm:$0xff] %v1168_v29 }
 0x453   :  { %1516 = shalt.err (!%p1513_p8)
}
 0x454   :  { %s1517_s16 = scalar_lea.hbm %s1696_s4, 256 }
 0x455   :  { %p1518_p9 = scmp.ne.s32.totalorder %s1696_s4, %s1517_s16  ;;  %p1521_p10 = scmp.lt.u32.totalorder %s1517_s16, %s1696_s4 }
 0x457   :  { %p1523_p11 = pnand %p1521_p10, %p1518_p9 }
 0x459   :  { %1526 = shalt.err (!%p1523_p11)
}
 0x45a   :  { %1180 = dma.vmem_to_hbm [thread:$0]  %s1178_s13, 256, %s1696_s4, [#allocation4]  }
 0x45b   :  { %1533 = dma.done.wait [#allocation4], 256  }
 0x45c   :  { %1534 = vsyncadd [#allocation4], 4294967040 }
 0x45d   :  { %1184 = vsyncpa [#allocation3], 1 }
 0x45e   :  { %1185 = vsyncpa [#allocation6], 1 }
 0x45f   :  { %1186 = vsyncpa [#allocation9], 1 }
 0x460   :  { %1187 = vsyncpa [#allocation4], 1 }

</bundles_post_ra>
